<compile_context>
chip_gen: v7x
topology: tpu7x:2x2x1
jax: 0.10.0
libtpu: 0.0.40
codegen_flags: <defaults>
</compile_context>

<pallas_src>
import functools

import jax
import jax.numpy as jnp
from jax.experimental import pallas as pl
from jax.experimental.pallas import tpu as pltpu


def _round_up(a, m):
    return (a + m - 1) // m * m


def _softmax_loss_kernel(x_ref, w_ref, scale_ref, bias_ref, lab_ref, out_ref,
                         m_ref, l_ref, t_ref, *, c_tile):
    # x_ref:     (B_TILE, D_pad) bf16 — embeddings (resident across the C axis)
    # w_ref:     (C_TILE, D_pad) bf16 — streamed raw class_map block
    # scale_ref: (1, C_TILE)     f32  — precomputed inv_norm / temperature (0 on padded cols)
    # bias_ref:  (1, C_TILE)     f32  — 0 on real columns, -inf on padded columns
    # lab_ref:   (B_TILE, 1)     i32  — labels for this B tile
    # out_ref:   (B_TILE, 1)     f32  — per-example loss (written on last C step)
    # m_ref/l_ref/t_ref: (B_TILE, 1) f32 scratch — running max / sum-exp / label logit
    j = pl.program_id(1)

    @pl.when(j == 0)
    def _init():
        m_ref[...] = jnp.full_like(m_ref, -jnp.inf)
        l_ref[...] = jnp.zeros_like(l_ref)
        t_ref[...] = jnp.zeros_like(t_ref)

    # Raw matmul on the MXU (bf16 operands, f32 accumulation); contract D-of-x against
    # D-of-w directly (no materialized (D, C) transpose, no normalized-weight copy).
    logits_raw = jax.lax.dot_general(
        x_ref[...], w_ref[...],
        dimension_numbers=(((1,), (1,)), ((), ())),
        preferred_element_type=jnp.float32)                          # (B_TILE, C_TILE) f32

    # Precomputed per-column scale folds normalization and 1/temperature into one multiply;
    # precomputed bias masks padded columns to -inf without a compare+select pass.
    scaled = logits_raw * scale_ref[...]                             # (B_TILE, C_TILE)
    s = scaled + bias_ref[...]                                       # padded cols -> -inf

    # Label logit, fused into the same pass (compare+select, no (B, C) one-hot buffer).
    # Valid labels are < n_classes so they can only hit real (unbiased) columns.
    col = j * c_tile + jax.lax.broadcasted_iota(jnp.int32, s.shape, 1)
    lab = lab_ref[...]                                               # (B_TILE, 1) i32
    t_ref[...] += jnp.sum(jnp.where(col == lab, scaled, 0.0), axis=1, keepdims=True)

    # Online (flash-style) logsumexp update.
    m_old = m_ref[...]
    m_new = jnp.maximum(m_old, jnp.max(s, axis=1, keepdims=True))
    alpha = jnp.exp(m_old - m_new)
    l_ref[...] = alpha * l_ref[...] + jnp.sum(jnp.exp(s - m_new), axis=1, keepdims=True)
    m_ref[...] = m_new

    @pl.when(j == pl.num_programs(1) - 1)
    def _finalize():
        out_ref[...] = m_ref[...] + jnp.log(l_ref[...]) - t_ref[...]


def _pad2d(a, rows, cols, dtype):
    """Cast + zero-pad in one pass (no separate f32 padded copy)."""
    if a.shape == (rows, cols) and a.dtype == dtype:
        return a
    return jnp.zeros((rows, cols), dtype).at[:a.shape[0], :a.shape[1]].set(a.astype(dtype))


def softmax_criterion_loss(batch, class_map, labels, temperature,
                           *, b_tile=None, c_tile=None):
    """batch: (B, D), class_map: (C, D), labels: (B,) int → scalar f32 loss."""
    B, D = batch.shape
    C, D2 = class_map.shape
    assert D == D2

    # Lane-dense padding / tile selection.
    d_pad = _round_up(D, 128)
    if b_tile is None:
        if B >= 512:
            b_tile = 256          # fills the 256-wide MXU on v6e/v7x, keeps nb >= 2 on v7x
        elif B >= 128:
            b_tile = 128
        else:
            b_tile = _round_up(B, 8)
    if c_tile is None:
        c_tile = 1024 if C >= 1024 else _round_up(C, 128)
    b_pad = _round_up(B, b_tile)
    c_pad = _round_up(C, c_tile)
    nb = b_pad // b_tile
    nc = c_pad // c_tile

    # bf16 operands: halves streamed weight HBM traffic and double-buffered VMEM footprint.
    x = _pad2d(batch, b_pad, d_pad, jnp.bfloat16)
    w = _pad2d(class_map, c_pad, d_pad, jnp.bfloat16)
    lab = jnp.zeros((b_pad, 1), jnp.int32).at[:B, 0].set(labels.astype(jnp.int32))

    # Precomputed per-class scale = 1 / max(||w||, 1e-12) / temperature (f32, matches
    # F.normalize's eps), zero on padded columns; padding bias is -inf on padded columns.
    sumsq = jnp.sum(jnp.square(class_map.astype(jnp.float32)), axis=1)           # (C,)
    inv_norm = jax.lax.rsqrt(jnp.maximum(sumsq, 1e-24))                          # (C,)
    scale_row = jnp.zeros((1, c_pad), jnp.float32).at[0, :C].set(
        inv_norm * jnp.float32(1.0 / temperature))
    bias_row = jnp.full((1, c_pad), -jnp.inf, jnp.float32).at[0, :C].set(0.0)

    # VMEM budget per generation: ~48 MiB on v7x (64 MiB physical), ~96 MiB on v5e/v6e.
    try:
        phys_vmem = pltpu.get_tpu_info().vmem_capacity_bytes
        vmem_limit = min(96 * 1024 * 1024, int(phys_vmem) * 3 // 4)
    except Exception:
        vmem_limit = 48 * 1024 * 1024   # safe everywhere

    kernel = functools.partial(_softmax_loss_kernel, c_tile=c_tile)

    per_example = pl.pallas_call(
        kernel,
        out_shape=jax.ShapeDtypeStruct((b_pad, 1), jnp.float32),
        grid_spec=pltpu.PrefetchScalarGridSpec(
            num_scalar_prefetch=0,
            grid=(nb, nc),
            in_specs=[
                pl.BlockSpec((b_tile, d_pad), lambda i, j: (i, 0)),   # batch (resident over j)
                pl.BlockSpec((c_tile, d_pad), lambda i, j: (j, 0)),   # class_map (streamed)
                pl.BlockSpec((1, c_tile), lambda i, j: (0, j)),       # per-class scale
                pl.BlockSpec((1, c_tile), lambda i, j: (0, j)),       # padding bias
                pl.BlockSpec((b_tile, 1), lambda i, j: (i, 0)),       # labels
            ],
            out_specs=pl.BlockSpec((b_tile, 1), lambda i, j: (i, 0)),
            scratch_shapes=[
                pltpu.VMEM((b_tile, 1), jnp.float32),   # running max
                pltpu.VMEM((b_tile, 1), jnp.float32),   # running sum-exp
                pltpu.VMEM((b_tile, 1), jnp.float32),   # label logit accumulator
            ],
        ),
        compiler_params=pltpu.CompilerParams(
            dimension_semantics=("parallel", "arbitrary"),
            vmem_limit_bytes=vmem_limit,
        ),
        cost_estimate=pl.CostEstimate(
            flops=2 * b_pad * c_pad * d_pad,
            transcendentals=b_pad * c_pad,
            bytes_accessed=(b_pad * d_pad * 2 + nb * c_pad * d_pad * 2
                            + nb * c_pad * 8 + b_pad * 8),
        ),
    )(x, w, scale_row, bias_row, lab)

    # Mean over the real (unpadded) batch rows only.
    return jnp.sum(per_example[:B, 0]) / jnp.float32(B)


def _reference_loss(batch, class_map, labels, temperature):
    # Pure-JAX f32 reference reproducing the PyTorch forward, for correctness check.
    w_n = class_map / jnp.maximum(
        jnp.linalg.norm(class_map, axis=1, keepdims=True), 1e-12)
    logits = (batch @ w_n.T) / temperature
    logz = jax.scipy.special.logsumexp(logits, axis=1)
    label_logit = jnp.take_along_axis(
        logits, labels[:, None].astype(jnp.int32), axis=1)[:, 0]
    return jnp.mean(logz - label_logit)


# TODO(synk): the low_weight / high_weight concat branch (get_runtime_class_map /
# load_low_dimensional_classifier) is training-time parameter surgery, not a kernel op —
# only the default (self.class_map) forward path is implemented.

if __name__ == "__main__":
    # Small shapes consistent with the module: batch of embeddings (B, embed_dim),
    # class_map of shape (n_classes, embed_dim).
    B = 8
    EMBED_DIM = 32
    N_CLASSES = 16
    TEMPERATURE = 0.05   # typical opt.loss_softmax_temperature

    key = jax.random.PRNGKey(0)
    k_batch, k_w, k_lab = jax.random.split(key, 3)

    batch = jax.random.normal(k_batch, (B, EMBED_DIM), dtype=jnp.float32)

    # Deterministic parameter init mirroring the module's __init__:
    #   class_map ~ Uniform(-stdv, stdv), stdv = 1/sqrt(embed_dim)
    stdv = 1.0 / jnp.sqrt(jnp.float32(EMBED_DIM))
    class_map = jax.random.uniform(
        k_w, (N_CLASSES, EMBED_DIM), dtype=jnp.float32, minval=-stdv, maxval=stdv)

    labels = jax.random.randint(k_lab, (B,), 0, N_CLASSES, dtype=jnp.int32)

    loss = softmax_criterion_loss(batch, class_map, labels, TEMPERATURE)
    loss = jax.block_until_ready(loss)

    ref = _reference_loss(batch, class_map, labels, TEMPERATURE)
    # Kernel runs the matmul with bf16 operands (MXU peak) and f32 accumulation, and
    # 1/temperature = 20 amplifies absolute logit error, so the tolerance is loosened.
    assert jnp.allclose(loss, ref, rtol=5e-2, atol=5e-1), (loss, ref)

    print("KERNEL_OK")
</pallas_src>

<mosaic_0001>
module attributes {stable_mosaic.version = 11 : i64} {
  func.func @_softmax_loss_kernel(%arg0: i32, %arg1: i32, %arg2: memref<8x128xbf16, #tpu.memory_space<vmem>>, %arg3: memref<128x128xbf16, #tpu.memory_space<vmem>>, %arg4: memref<1x128xf32, #tpu.memory_space<vmem>>, %arg5: memref<1x128xf32, #tpu.memory_space<vmem>>, %arg6: memref<8x1xi32, #tpu.memory_space<vmem>>, %arg7: memref<8x1xf32, #tpu.memory_space<vmem>>, %arg8: memref<8x1xf32, #tpu.memory_space<vmem>>, %arg9: memref<8x1xf32, #tpu.memory_space<vmem>>, %arg10: memref<8x1xf32, #tpu.memory_space<vmem>>) attributes {dimension_semantics = [#tpu.dimension_semantics<parallel>, #tpu.dimension_semantics<arbitrary>], iteration_bounds = array<i64: 1, 1>, scalar_prefetch = 0 : i64, scratch_operands = 3 : i64, tpu.core_type = #tpu.core_type<tc>, window_params = [{transform_indices = @transform_0, window_bounds = array<i64: 8, 128>}, {transform_indices = @transform_1, window_bounds = array<i64: 128, 128>}, {transform_indices = @transform_2, window_bounds = array<i64: 1, 128>}, {transform_indices = @transform_3, window_bounds = array<i64: 1, 128>}, {transform_indices = @transform_4, window_bounds = array<i64: 8, 1>}, {transform_indices = @transform_5, window_bounds = array<i64: 8, 1>}]} {
    %c0_i32 = arith.constant 0 : i32
    %0 = arith.cmpi eq, %arg1, %c0_i32 : i32
    %1 = arith.extui %0 : i1 to i32
    %c0_i32_0 = arith.constant 0 : i32
    %2 = arith.cmpi ne, %1, %c0_i32_0 : i32
    scf.if %2 {
      %cst_28 = arith.constant 0xFF800000 : f32
      %45 = vector.broadcast %cst_28 : f32 to vector<8x1xf32>
      %c0_29 = arith.constant 0 : index
      %c0_30 = arith.constant 0 : index
      %46 = vector.load %arg8[%c0_29, %c0_30] : memref<8x1xf32, #tpu.memory_space<vmem>>, vector<8x1xf32>
      tpu.vector_store %arg8[%c0_29, %c0_30], %45 {strides = array<i32>} : memref<8x1xf32, #tpu.memory_space<vmem>>, vector<8x1xf32>,
      %cst_31 = arith.constant 0.000000e+00 : f32
      %47 = vector.broadcast %cst_31 : f32 to vector<8x1xf32>
      %c0_32 = arith.constant 0 : index
      %c0_33 = arith.constant 0 : index
      %48 = vector.load %arg9[%c0_32, %c0_33] : memref<8x1xf32, #tpu.memory_space<vmem>>, vector<8x1xf32>
      tpu.vector_store %arg9[%c0_32, %c0_33], %47 {strides = array<i32>} : memref<8x1xf32, #tpu.memory_space<vmem>>, vector<8x1xf32>,
      %cst_34 = arith.constant 0.000000e+00 : f32
      %49 = vector.broadcast %cst_34 : f32 to vector<8x1xf32>
      %c0_35 = arith.constant 0 : index
      %c0_36 = arith.constant 0 : index
      %50 = vector.load %arg10[%c0_35, %c0_36] : memref<8x1xf32, #tpu.memory_space<vmem>>, vector<8x1xf32>
      tpu.vector_store %arg10[%c0_35, %c0_36], %49 {strides = array<i32>} : memref<8x1xf32, #tpu.memory_space<vmem>>, vector<8x1xf32>,
    } else {
    }
    %c0 = arith.constant 0 : index
    %c0_1 = arith.constant 0 : index
    %3 = vector.load %arg2[%c0, %c0_1] : memref<8x128xbf16, #tpu.memory_space<vmem>>, vector<8x128xbf16>
    %c0_2 = arith.constant 0 : index
    %c0_3 = arith.constant 0 : index
    %4 = vector.load %arg3[%c0_2, %c0_3] : memref<128x128xbf16, #tpu.memory_space<vmem>>, vector<128x128xbf16>
    %cst = arith.constant dense<0.000000e+00> : vector<8x128xf32>
    %5 = tpu.matmul %3, %4, %cst {dimension_numbers = #tpu.dot_dimension_numbers<[1], [1], [0], [0], [0, 0, 1, 0], [], []>} : vector<8x128xbf16>, vector<128x128xbf16>, vector<8x128xf32> -> vector<8x128xf32>
    %c0_4 = arith.constant 0 : index
    %c0_5 = arith.constant 0 : index
    %6 = vector.load %arg4[%c0_4, %c0_5] : memref<1x128xf32, #tpu.memory_space<vmem>>, vector<1x128xf32>
    %7 = vector.broadcast %6 : vector<1x128xf32> to vector<8x128xf32>
    %8 = arith.mulf %5, %7 : vector<8x128xf32>
    %c0_6 = arith.constant 0 : index
    %c0_7 = arith.constant 0 : index
    %9 = vector.load %arg5[%c0_6, %c0_7] : memref<1x128xf32, #tpu.memory_space<vmem>>, vector<1x128xf32>
    %10 = vector.broadcast %9 : vector<1x128xf32> to vector<8x128xf32>
    %11 = arith.addf %8, %10 : vector<8x128xf32>
    %c128_i32 = arith.constant 128 : i32
    %12 = arith.muli %arg1, %c128_i32 : i32
    %13 = tpu.iota {dimensions = array<i32: 1>} : vector<8x128xi32>
    %14 = vector.broadcast %12 : i32 to vector<8x128xi32>
    %15 = arith.addi %14, %13 : vector<8x128xi32>
    %c0_8 = arith.constant 0 : index
    %c0_9 = arith.constant 0 : index
    %16 = vector.load %arg6[%c0_8, %c0_9] : memref<8x1xi32, #tpu.memory_space<vmem>>, vector<8x1xi32>
    %c0_10 = arith.constant 0 : index
    %c0_11 = arith.constant 0 : index
    %17 = vector.load %arg10[%c0_10, %c0_11] : memref<8x1xf32, #tpu.memory_space<vmem>>, vector<8x1xf32>
    %18 = vector.broadcast %16 : vector<8x1xi32> to vector<8x128xi32>
    %19 = arith.cmpi eq, %15, %18 : vector<8x128xi32>
    %cst_12 = arith.constant 0.000000e+00 : f32
    %20 = vector.broadcast %cst_12 : f32 to vector<8x128xf32>
    %21 = arith.select %19, %8, %20 : vector<8x128xi1>, vector<8x128xf32>
    %cst_13 = arith.constant dense<0.000000e+00> : vector<8xf32>
    %22 = vector.multi_reduction <add>, %21, %cst_13 [1] : vector<8x128xf32> to vector<8xf32>
    %23 = vector.shape_cast %22 : vector<8xf32> to vector<8x1xf32>
    %24 = arith.addf %17, %23 : vector<8x1xf32>
    %c0_14 = arith.constant 0 : index
    %c0_15 = arith.constant 0 : index
    %25 = vector.load %arg10[%c0_14, %c0_15] : memref<8x1xf32, #tpu.memory_space<vmem>>, vector<8x1xf32>
    tpu.vector_store %arg10[%c0_14, %c0_15], %24 {strides = array<i32>} : memref<8x1xf32, #tpu.memory_space<vmem>>, vector<8x1xf32>,
    %c0_16 = arith.constant 0 : index
    %c0_17 = arith.constant 0 : index
    %26 = vector.load %arg8[%c0_16, %c0_17] : memref<8x1xf32, #tpu.memory_space<vmem>>, vector<8x1xf32>
    %cst_18 = arith.constant dense<0xFF800000> : vector<8xf32>
    %27 = vector.multi_reduction <maximumf>, %11, %cst_18 [1] : vector<8x128xf32> to vector<8xf32>
    %28 = vector.shape_cast %27 : vector<8xf32> to vector<8x1xf32>
    %29 = arith.maximumf %26, %28 : vector<8x1xf32>
    %30 = arith.subf %26, %29 : vector<8x1xf32>
    %31 = math.exp %30 : vector<8x1xf32>
    %c0_19 = arith.constant 0 : index
    %c0_20 = arith.constant 0 : index
    %32 = vector.load %arg9[%c0_19, %c0_20] : memref<8x1xf32, #tpu.memory_space<vmem>>, vector<8x1xf32>
    %33 = arith.mulf %31, %32 : vector<8x1xf32>
    %34 = vector.broadcast %29 : vector<8x1xf32> to vector<8x128xf32>
    %35 = arith.subf %11, %34 : vector<8x128xf32>
    %36 = math.exp %35 : vector<8x128xf32>
    %cst_21 = arith.constant dense<0.000000e+00> : vector<8xf32>
    %37 = vector.multi_reduction <add>, %36, %cst_21 [1] : vector<8x128xf32> to vector<8xf32>
    %38 = vector.shape_cast %37 : vector<8xf32> to vector<8x1xf32>
    %39 = arith.addf %33, %38 : vector<8x1xf32>
    %c0_22 = arith.constant 0 : index
    %c0_23 = arith.constant 0 : index
    %40 = vector.load %arg9[%c0_22, %c0_23] : memref<8x1xf32, #tpu.memory_space<vmem>>, vector<8x1xf32>
    tpu.vector_store %arg9[%c0_22, %c0_23], %39 {strides = array<i32>} : memref<8x1xf32, #tpu.memory_space<vmem>>, vector<8x1xf32>,
    %c0_24 = arith.constant 0 : index
    %c0_25 = arith.constant 0 : index
    %41 = vector.load %arg8[%c0_24, %c0_25] : memref<8x1xf32, #tpu.memory_space<vmem>>, vector<8x1xf32>
    tpu.vector_store %arg8[%c0_24, %c0_25], %29 {strides = array<i32>} : memref<8x1xf32, #tpu.memory_space<vmem>>, vector<8x1xf32>,
    %c0_i32_26 = arith.constant 0 : i32
    %42 = arith.cmpi eq, %arg1, %c0_i32_26 : i32
    %43 = arith.extui %42 : i1 to i32
    %c0_i32_27 = arith.constant 0 : i32
    %44 = arith.cmpi ne, %43, %c0_i32_27 : i32
    scf.if %44 {
      %c0_28 = arith.constant 0 : index
      %c0_29 = arith.constant 0 : index
      %45 = vector.load %arg8[%c0_28, %c0_29] : memref<8x1xf32, #tpu.memory_space<vmem>>, vector<8x1xf32>
      %c0_30 = arith.constant 0 : index
      %c0_31 = arith.constant 0 : index
      %46 = vector.load %arg9[%c0_30, %c0_31] : memref<8x1xf32, #tpu.memory_space<vmem>>, vector<8x1xf32>
      %47 = math.log %46 : vector<8x1xf32>
      %48 = arith.addf %45, %47 : vector<8x1xf32>
      %c0_32 = arith.constant 0 : index
      %c0_33 = arith.constant 0 : index
      %49 = vector.load %arg10[%c0_32, %c0_33] : memref<8x1xf32, #tpu.memory_space<vmem>>, vector<8x1xf32>
      %50 = arith.subf %48, %49 : vector<8x1xf32>
      %c0_34 = arith.constant 0 : index
      %c0_35 = arith.constant 0 : index
      %51 = vector.load %arg7[%c0_34, %c0_35] : memref<8x1xf32, #tpu.memory_space<vmem>>, vector<8x1xf32>
      tpu.vector_store %arg7[%c0_34, %c0_35], %50 {strides = array<i32>} : memref<8x1xf32, #tpu.memory_space<vmem>>, vector<8x1xf32>,
    } else {
    }
    return
  }
  func.func @transform_0(%arg0: i32, %arg1: i32) -> (i32, i32) {
    %c0_i32 = arith.constant 0 : i32
    %c0_i32_0 = arith.constant 0 : i32
    return %arg0, %c0_i32 : i32, i32
  }
  func.func @transform_1(%arg0: i32, %arg1: i32) -> (i32, i32) {
    %c0_i32 = arith.constant 0 : i32
    %c0_i32_0 = arith.constant 0 : i32
    return %arg1, %c0_i32 : i32, i32
  }
  func.func @transform_2(%arg0: i32, %arg1: i32) -> (i32, i32) {
    %c0_i32 = arith.constant 0 : i32
    %c0_i32_0 = arith.constant 0 : i32
    return %c0_i32, %arg1 : i32, i32
  }
  func.func @transform_3(%arg0: i32, %arg1: i32) -> (i32, i32) {
    %c0_i32 = arith.constant 0 : i32
    %c0_i32_0 = arith.constant 0 : i32
    return %c0_i32, %arg1 : i32, i32
  }
  func.func @transform_4(%arg0: i32, %arg1: i32) -> (i32, i32) {
    %c0_i32 = arith.constant 0 : i32
    %c0_i32_0 = arith.constant 0 : i32
    return %arg0, %c0_i32 : i32, i32
  }
  func.func @transform_5(%arg0: i32, %arg1: i32) -> (i32, i32) {
    %c0_i32 = arith.constant 0 : i32
    %c0_i32_0 = arith.constant 0 : i32
    return %arg0, %c0_i32 : i32, i32
  }
}

</mosaic_0001>

<bundles_post_ra>
// kernel: tpu_custom_call.1
= control target key start
LH: loop header
LB: loop body
LE: loop exit
PB: predicated region body
PF: predicated region fallthrough
CT: control target
= control target key end

     0   :  { %10 = vsyncpa [#allocation6], 0  ;;  %s305_s18 = smov [#allocation5]   ;;  %s376_s0 = inlined_call_operand.vmem [shape: bf16[8,128], index: 0, kind: input, shape index: {}]   ;;  %s377_s1 = inlined_call_operand.hbm [shape: bf16[128,128], index: 1, kind: input, shape index: {}]   ;;  %s378_s2 = inlined_call_operand.vmem [shape: f32[1,128], index: 2, kind: input, shape index: {}]   ;;  %s379_s3 = inlined_call_operand.vmem [shape: f32[1,128], index: 3, kind: input, shape index: {}]   ;;  %s380_s4 = inlined_call_operand.vmem [shape: s32[8,1], index: 4, kind: input, shape index: {}]   ;;  %s381_s5 = inlined_call_operand.vmem [shape: f32[8,1], index: 5, kind: output, shape index: {}]  }
   0x1   :  { %s18_s19 = sshll.u32 %s305_s18, 4  ;;  %s281_s22 = scalar_lea.hbm %s377_s1, 1024  ;;  %s19_s19 = int_to_ptr.vmem [resolvable:$true] %s18_s19 }
   0x2   :  { %p282_p0 = scmp.ne.s32.totalorder %s377_s1, %s281_s22  ;;  %p285_p1 = scmp.lt.u32.totalorder %s281_s22, %s377_s1 }
   0x4   :  { %p287_p2 = pnand %p285_p1, %p282_p0 }
   0x6   :  { %290 = shalt.err (!%p287_p2)
}
   0x7   :  { %s291_s27 = scalar_lea.vmem %s19_s19, 1024  ;;  %p296_p4 = scmp.lt.s32.totalorder %s19_s19, %s19_s19 }
   0x8   :  { %p292_p3 = scmp.ne.s32.totalorder %s19_s19, %s291_s27  ;;  %p297_p5 = scmp.lt.s32.totalorder %s291_s27, %s291_s27 }
   0xa   :  { %p298_p6 = por %p297_p5, %p296_p4 }
   0xc   :  { %p299_p7 = pnand %p298_p6, %p292_p3 }
   0xe   :  { %302 = shalt.err (!%p299_p7)
}
   0xf   :  { %s306_s28 = smov 64   ;;  %s307_s29 = smov 4  }
  0x10   :  { %24 = dma.hbm_to_vmem [thread:$0]  %s377_s1, 1024, %s19_s19, [#allocation6], %s306_s28, %s306_s28, %s307_s29  }
  0x11   :  { %303 = dma.done.wait [#allocation6], 1024  }
  0x12   :  { %304 = vsyncadd [#allocation6], 4294966272  ;;  %v308_v0 = vmov 0.0   ;;  %vm309_vm0 = vmmov 0   ;;  %v310_v1 = vmov 0   ;;  %v267_v2 = vld [vmem:[#allocation5] sm:$0xff]   ;;  %v165_v28 = vlaneseq }
  0x13   :  { %238 = vmatprep.subr.bf16.mxu0 %v308_v0  ;;  %254 = vmatprep.mubr.msk.bf16.mxu0 %vm309_vm0, %v308_v0  ;;  %v268_v3 = vld [vmem:[#allocation5 + $0x8] sm:$0xff]   ;;  %v269_v5 = vld [vmem:[#allocation5 + $0x10] sm:$0xff]   ;;  %v270_v6 = vld [vmem:[#allocation5 + $0x18] sm:$0xff]   ;;  %vm39_vm1 = vcmask 7168   ;;  %v311_v12 = vmov -inf  }
  0x14   :  { %266 = vset.pattern.permute.xlu1 %v310_v1  ;;  %265 = vset.pattern.permute.xlu0 %v310_v1  ;;  %v169_v4 = vld [vmem:[%s380_s4] sm:$0xff]  ;;  %v271_v7 = vld [vmem:[#allocation5 + $0x20] sm:$0xff]   ;;  %v273_v9 = vld [vmem:[#allocation5 + $0x30] sm:$0xff]   ;;  %40 = vst.msk [vmem:[#allocation2] sm:$0xff] %vm39_vm1, %v311_v12  ;;  %v166_v29 = vand.u32 127, %v165_v28 }
  0x15   :  { %239 = vmatpush3.bf16.xpose.msra.mxu0 %v267_v2  ;;  %172 = vperm.xlu1 %266, %v169_v4   ;;  %v272_v8 = vld [vmem:[#allocation5 + $0x28] sm:$0xff]   ;;  %v274_v10 = vld [vmem:[#allocation5 + $0x38] sm:$0xff]   ;;  %41 = vst.msk [vmem:[#allocation3] sm:$0xff] %vm39_vm1, %v308_v0  ;;  %42 = vst.msk [vmem:[#allocation4] sm:$0xff] %vm39_vm1, %v308_v0 }
  0x16   :  { %240 = vmatprep.subr.bf16.mxu0 %v308_v0  ;;  %v43_v11 = vld [vmem:[%s376_s0] sm:$0xf] }
  0x17   :  { %v227_v13 = vld [vmem:[%s378_s2] ss:$0 sm:$0xff] }
  0x18   :  { %v228_v15 = vld [vmem:[%s379_s3] ss:$0 sm:$0xff] }
  0x1b   :  { %v181_v21 = vld [vmem:[#allocation2] sm:$0xff] }
  0x1c   :  { %v188_v35 = vld [vmem:[#allocation3] sm:$0xff]  ;;  %v170_v39 = vld [vmem:[#allocation4] sm:$0xff] }
  0x1d   :  { %241 = vmatpush3.bf16.xpose.msra.mxu0 %v268_v3 }
  0x1e   :  { %242 = vmatprep.subr.bf16.mxu0 %v308_v0 }
  0x25   :  { %243 = vmatpush3.bf16.xpose.msra.mxu0 %v269_v5 }
  0x26   :  { %244 = vmatprep.subr.bf16.mxu0 %v308_v0 }
  0x2d   :  { %245 = vmatpush3.bf16.xpose.msra.mxu0 %v270_v6 }
  0x2e   :  { %246 = vmatprep.subr.bf16.mxu0 %v308_v0 }
  0x35   :  { %247 = vmatpush3.bf16.xpose.msra.mxu0 %v271_v7 }
  0x36   :  { %248 = vmatprep.subr.bf16.mxu0 %v308_v0 }
  0x3d   :  { %249 = vmatpush3.bf16.xpose.msra.mxu0 %v272_v8 }
  0x3e   :  { %250 = vmatprep.subr.bf16.mxu0 %v308_v0 }
  0x45   :  { %251 = vmatpush3.bf16.xpose.msra.mxu0 %v273_v9 }
  0x46   :  { %252 = vmatprep.subr.bf16.mxu0 %v308_v0 }
  0x4d   :  { %253 = vmatpush3.bf16.xpose.msra.mxu0 %v274_v10 }
  0x54   :  { %255 = vmatmul.mubr.bf16.vlgmr.msra.gmra.mrb[0].mxu0 %v43_v11 }
  0x94   :  { %v173_v30 = vpop.permute.xlu1 %172 }
  0x95   :  { %vm174_vm2 = vcmp.eq.s32.totalorder %v166_v29, %v173_v30 }
 0x127   :  { %v142_v14 = vpop.f32.mrb[0].mxu0 }
 0x128   :  { %v155_v16 = vmul.f32 %v227_v13, %v142_v14  ;;  %v256_v17 = vpop.f32.mrb[1].mxu0 }
 0x129   :  { %v145_v18 = vpop.f32.mrb[2].mxu0 }
 0x12a   :  { %v257_v19 = vpop.f32.mrb[3].mxu0  ;;  %v163_v20 = vadd.f32 %v228_v15, %v155_v16  ;;  %v175_v32 = vsel %vm174_vm2, %v155_v16, 0.0 }
 0x12c   :  { %182 = vmax.xlane.f32.xlu0 %v163_v20 }
 0x1b9   :  { %v183_v22 = vpop.xlane.xlu0 %182 }
 0x1ba   :  { %v184_v23 = vmax.f32 %v181_v21, %v183_v22 }
 0x1bc   :  { %v185_v24 = vsub.f32 %v181_v21, %v184_v23  ;;  %202 = vst.msk [vmem:[#allocation2] sm:$0xff] %vm39_vm1, %v184_v23  ;;  %192 = vperm.xlu0 %265, %v184_v23  }
 0x1be   :  { %v186_v33 = vmul.f32 1.442695, %v185_v24 }
 0x1c3   :  { %v206_v45 = vld [vmem:[#allocation2] sm:$0xff] }
 0x23b   :  { %v193_v25 = vpop.permute.xlu0 %192 }
 0x23c   :  { %v195_v26 = vsub.f32 %v163_v20, %v193_v25 }
 0x23e   :  { %v196_v27 = vmul.f32 1.442695, %v195_v26 }
 0x240   :  { %275 = vpow2.f32 %v196_v27 }
 0x241   :  { %277 = vpow2.f32 %v186_v33 }
 0x24a   :  { %v276_v31 = vpop.eup %275 }
 0x24b   :  { %198 = vadd.xlane.f32.xlu1 %v276_v31  ;;  %v278_v34 = vpop.eup %277 }
 0x24c   :  { %v189_v36 = vmul.f32 %v278_v34, %v188_v35 }
 0x24f   :  { %176 = vadd.xlane.f32.xlu1 %v175_v32 }
 0x2d8   :  { %v199_v37 = vpop.xlane.xlu1 %198 }
 0x2d9   :  { %v200_v38 = vadd.f32 %v199_v37, %v189_v36 }
 0x2db   :  { %201 = vst.msk [vmem:[#allocation3] sm:$0xff] %vm39_vm1, %v200_v38 }
 0x2dc   :  { %v177_v40 = vpop.xlane.xlu1 %176 }
 0x2dd   :  { %v178_v41 = vadd.f32 %v177_v40, %v170_v39 }
 0x2df   :  { %180 = vst.msk [vmem:[#allocation4] sm:$0xff] %vm39_vm1, %v178_v41 }
 0x2e2   :  { %v207_v42 = vld [vmem:[#allocation3] sm:$0xff] }
 0x2e3   :  { %279 = vlog2.f32 %v207_v42 }
 0x2e6   :  { %v211_v47 = vld [vmem:[#allocation4] sm:$0xff] }
 0x2ed   :  { %v280_v43 = vpop.eup %279 }
 0x2ee   :  { %v209_v44 = vmul.f32 0.6931472, %v280_v43 }
 0x2f0   :  { %v210_v46 = vadd.f32 %v209_v44, %v206_v45 }
 0x2f2   :  { %v212_v48 = vsub.f32 %v210_v46, %v211_v47 }
 0x2f4   :  { %213 = vst.msk [vmem:[%s381_s5] sm:$0xff] %vm39_vm1, %v212_v48 }
 0x2f5   :  { %218 = vsyncpa [#allocation6], 1 }

</bundles_post_ra>
